<compile_context>
chip_gen: v5e
topology: v5e:2x2
jax: 0.10.0
libtpu: 0.0.40
codegen_flags: <defaults>
</compile_context>

<pallas_src>
import numpy as np
import jax
import jax.numpy as jnp
from jax.experimental import pallas as pl
from jax.experimental.pallas import tpu as pltpu


# ----------------------------- weight builders ------------------------------

def _gaussian_weights_1d(kernel_size: int) -> np.ndarray:
    """1-D factor of the (rank-1) gaussian kernel used by GaussianFilter."""
    mean = (kernel_size - 1) / 2.0
    variance = (kernel_size / 6.0) ** 2.0
    coords = np.arange(kernel_size, dtype=np.float64)
    g = np.exp(-((coords - mean) ** 2) / (2.0 * variance))
    g = g / g.sum()          # outer(g, g) == PyTorch's normalized 2-D kernel
    return g.astype(np.float32)


def _band_matrix(K: int, Wp: int, W_out: int, wh) -> np.ndarray:
    """Banded (Wp, W_out) tap matrix so that `v @ band` == horizontal K-tap."""
    band = np.zeros((Wp, W_out), dtype=np.float32)
    cols = np.arange(W_out)
    for dx in range(K):
        band[cols + dx, cols] = 1.0 if wh is None else float(wh[dx])
    return band


# ------------------------------- Pallas kernel ------------------------------

def _make_filter_kernel(K, pad, H, W, recursions, wv, wh, final_scale,
                        out_dtype, A, L, use_mxu_h):
    """Separable depthwise KxK filter, zero padding, stride 1.

    A: sublane-aligned top-halo height (>= pad, multiple of 8) of the scratch.
    L: left-halo width of the scratch (pad, or 128 when W >= 128 for lane
       alignment of the interior store).
    use_mxu_h: run the horizontal pass as one MXU matmul against a banded
       (Wp, W_out) matrix passed as an extra input.
    """
    Wp = W + 2 * pad
    H_out = H + 2 * pad - K + 1
    W_out = Wp - K + 1
    if recursions > 1:
        # Fused recursions require "same" output size (odd K + zero padding).
        assert pad > 0 and H_out == H and W_out == W

    def vertical(tap):
        # Vertical taps are plain VMEM loads at different sublane offsets
        # (cheap: 3 vld slots), so they stay on the VPU.
        v = tap(0)
        if wv is not None:
            v = v * float(wv[0])
        for dy in range(1, K):
            t = tap(dy)
            v = v + (t * float(wv[dy]) if wv is not None else t)
        return v

    def horizontal(v, band):
        if use_mxu_h:
            bt = v.shape[0]
            acc = jnp.dot(v.reshape(bt * H_out, Wp), band,
                          preferred_element_type=jnp.float32,
                          precision=jax.lax.Precision.HIGHEST)
            return acc.reshape(bt, H_out, W_out)
        acc = v[:, :, 0:W_out]
        if wh is not None:
            acc = acc * float(wh[0])
        for dx in range(1, K):
            t = v[:, :, dx:dx + W_out]
            acc = acc + (t * float(wh[dx]) if wh is not None else t)
        return acc

    def kernel(*refs):
        refs = list(refs)
        x_ref = refs.pop(0)
        band = refs.pop(0)[...] if use_mxu_h else None
        o_ref = refs.pop(0)
        xp_ref = refs.pop(0) if pad > 0 else None
        bt = x_ref.shape[0]

        if pad > 0:
            # Zero ONLY the halo strips (not the whole scratch): the interior
            # is fully overwritten every recursion and the halo is never
            # written afterwards, so it stays zero for every fused recursion
            # (matches PyTorch's re-pad-with-zeros-each-recursion semantics).
            # This runs every grid step - do NOT guard with program_id==0
            # (each v7x TensorCore has its own scratch / iteration subset).
            zrow = jnp.zeros((bt, pad, Wp), jnp.float32)
            zcol = jnp.zeros((bt, H, pad), jnp.float32)
            xp_ref[:, A - pad:A, L - pad:L - pad + Wp] = zrow            # top
            xp_ref[:, A + H:A + H + pad, L - pad:L - pad + Wp] = zrow    # bottom
            xp_ref[:, A:A + H, L - pad:L] = zcol                         # left
            xp_ref[:, A:A + H, L + W:L + W + pad] = zcol                 # right

            # Interior store at an (8, *)-aligned offset (A % 8 == 0; L == 128
            # when W >= 128) -> unmasked stores.  Cast the tile to f32 once.
            xp_ref[:, A:A + H, L:L + W] = x_ref[...].astype(jnp.float32)

            def tap(dy):
                return xp_ref[:, A - pad + dy:A - pad + dy + H_out,
                              L - pad:L - pad + Wp]
        else:
            x32 = x_ref[...].astype(jnp.float32)

            def tap(dy):
                return x32[:, dy:dy + H_out, :]

        def one_pass():
            return horizontal(vertical(tap), band)

        if recursions > 1:
            # Shapes are recursion-invariant in the fused (same-padding) case:
            # carry state through the VMEM scratch inside a real loop so live
            # ranges stay bounded (no Python unrolling of full-tile temps).
            @pl.loop(0, recursions - 1)
            def _(_r):
                xp_ref[:, A:A + H, L:L + W] = one_pass()

        acc = one_pass()
        if final_scale is not None:
            # Deferred avg-pool normalization: one multiply for all recursions.
            acc = acc * float(final_scale ** recursions)
        o_ref[...] = acc.astype(out_dtype)

    return kernel


# --------------------------- tiling / VMEM sizing ----------------------------

def _vmem_budget_and_limit():
    """Generation-aware VMEM budget / scoped limit (v5e/v6e: 128 MiB physical,
    v7x: 64 MiB physical)."""
    try:
        cap = int(pltpu.get_tpu_info().vmem_capacity_bytes)
    except Exception:
        cap = 64 * 1024 * 1024          # conservative (v7x-sized) fallback
    if cap >= 96 * 1024 * 1024:         # v5e / v6e
        return 56 * 1024 * 1024, 80 * 1024 * 1024
    return 22 * 1024 * 1024, 40 * 1024 * 1024   # v7x


def _filter_planes(x, *, K, pad, recursions, wv, wh, final_scale):
    """Apply the separable filter to a stack of planes x: (B, H, W)."""
    B, H, W = x.shape
    Wp = W + 2 * pad
    H_out = H + 2 * pad - K + 1
    W_out = Wp - K + 1
    itemsize = jnp.dtype(x.dtype).itemsize

    # Sublane-aligned top halo; lane-aligned left halo for wide images.
    A = ((pad + 7) // 8) * 8 if pad > 0 else 0
    L = 128 if (pad > 0 and W >= 128) else pad
    # Offload horizontal taps to the (otherwise idle) MXU only when rows are
    # lane-dense; below that the banded matmul would waste the MXU.
    use_mxu_h = W_out >= 128

    budget, vmem_limit = _vmem_budget_and_limit()

    def vmem_bytes(bt):
        in_b = 2 * bt * H * W * itemsize                       # dbl-buffered in
        out_b = 2 * bt * H_out * W_out * itemsize              # dbl-buffered out
        scr = bt * (A + H + pad) * (L + W + pad) * 4 if pad > 0 else 0
        band = 3 * Wp * W_out * 4 if use_mxu_h else 0
        live = bt * (H * W + H_out * Wp + H_out * W_out) * 4   # f32 transients
        return in_b + out_b + scr + band + live

    fitting = [bt for bt in range(1, B + 1) if vmem_bytes(bt) <= budget] or [1]

    def pref(bt):
        steps = -(-B // bt)
        # >=4 steps keeps both v7x TensorCores fed with >=2 steps each (and
        # gives single-core chips DMA/compute overlap); even step counts
        # balance the two cores; exact division avoids a masked tail block;
        # then prefer the biggest tile.
        tier = 2 if steps >= 4 else (1 if steps >= 2 else 0)
        return (tier, steps % 2 == 0 or steps == 1, B % bt == 0, bt)

    BT = max(fitting, key=pref)
    grid = (pl.cdiv(B, BT),)

    kernel = _make_filter_kernel(K, pad, H, W, recursions, wv, wh, final_scale,
                                 x.dtype, A, L, use_mxu_h)

    in_specs = [pl.BlockSpec((BT, H, W), lambda b: (b, 0, 0))]
    args = [x]
    if use_mxu_h:
        # Constant banded tap matrix; same block every step -> stays resident.
        in_specs.append(pl.BlockSpec((Wp, W_out), lambda b: (0, 0)))
        args.append(jnp.asarray(_band_matrix(K, Wp, W_out, wh)))
    scratch = ([pltpu.VMEM((BT, A + H + pad, L + W + pad), jnp.float32)]
               if pad > 0 else [])

    return pl.pallas_call(
        kernel,
        out_shape=jax.ShapeDtypeStruct((B, H_out, W_out), x.dtype),
        grid=grid,
        in_specs=in_specs,
        out_specs=pl.BlockSpec((BT, H_out, W_out), lambda b: (b, 0, 0)),
        scratch_shapes=scratch,
        compiler_params=pltpu.CompilerParams(
            dimension_semantics=("parallel",),
            vmem_limit_bytes=vmem_limit),
    )(*args)


# ------------------------------- module wrapper -----------------------------

def filter_low(img, *, recursions: int = 1, kernel_size: int = 5,
               stride: int = 1, padding: bool = True, include_pad: bool = True,
               gaussian: bool = False):
    """JAX/Pallas equivalent of FilterLow.forward.  img: NCHW float array."""
    if stride != 1:
        # TODO(synk): strided output (FilterLow always uses stride=1).
        raise NotImplementedError("only stride=1 is implemented")

    pad = (kernel_size - 1) // 2 if padding else 0
    if gaussian:
        w1 = _gaussian_weights_1d(kernel_size)
        wv, wh, final_scale = w1, w1, None
    else:
        if pad > 0 and not include_pad:
            # TODO(synk): count_include_pad=False needs a per-pixel valid-tap divisor.
            raise NotImplementedError("only count_include_pad=True is implemented")
        wv, wh = None, None
        final_scale = 1.0 / float(kernel_size * kernel_size)

    N, C, H, W = img.shape
    x = img.reshape(N * C, H, W)

    # Output size is recursion-invariant only for same-padding (odd K) -> only
    # then fuse all recursions inside one pallas_call.
    fuse = (recursions == 1) or (padding and kernel_size % 2 == 1)
    if fuse:
        x = _filter_planes(x, K=kernel_size, pad=pad, recursions=recursions,
                           wv=wv, wh=wh, final_scale=final_scale)
    else:
        for _ in range(recursions):
            x = _filter_planes(x, K=kernel_size, pad=pad, recursions=1,
                               wv=wv, wh=wh, final_scale=final_scale)

    B, Ho, Wo = x.shape
    return x.reshape(N, C, Ho, Wo)


# ----------------------------------- main -----------------------------------

def _reference_numpy(x: np.ndarray, w2d: np.ndarray, pad: int) -> np.ndarray:
    N, C, H, W = x.shape
    K = w2d.shape[0]
    xp = np.pad(x, ((0, 0), (0, 0), (pad, pad), (pad, pad)))
    Ho, Wo = H + 2 * pad - K + 1, W + 2 * pad - K + 1
    out = np.zeros((N, C, Ho, Wo), np.float64)
    for dy in range(K):
        for dx in range(K):
            out += w2d[dy, dx] * xp[:, :, dy:dy + Ho, dx:dx + Wo]
    return out.astype(np.float32)


if __name__ == "__main__":
    k0, k1 = jax.random.split(jax.random.PRNGKey(0))

    K = 5
    w_avg = np.full((K, K), 1.0 / (K * K), dtype=np.float64)
    g1 = _gaussian_weights_1d(K).astype(np.float64)
    w_gauss = np.outer(g1, g1)

    # ---- small-W path (VPU horizontal taps) --------------------------------
    x = jax.random.normal(k0, (2, 4, 16, 16), dtype=jnp.float32)
    xnp = np.asarray(x)

    # Default FilterLow: AvgPool2d(5, stride=1, pad=2, count_include_pad=True)
    y = jax.block_until_ready(filter_low(x))
    np.testing.assert_allclose(np.asarray(y), _reference_numpy(xnp, w_avg, 2),
                               rtol=1e-4, atol=1e-5)

    # recursions=2, fused in-kernel via pl.loop (deferred 1/K^2 scaling)
    y2 = jax.block_until_ready(filter_low(x, recursions=2))
    ref2 = _reference_numpy(_reference_numpy(xnp, w_avg, 2), w_avg, 2)
    np.testing.assert_allclose(np.asarray(y2), ref2, rtol=1e-4, atol=1e-5)

    # Gaussian branch (depthwise 5x5 gaussian blur, pad=2)
    yg = jax.block_until_ready(filter_low(x, gaussian=True))
    np.testing.assert_allclose(np.asarray(yg),
                               _reference_numpy(xnp, w_gauss, 2),
                               rtol=1e-4, atol=1e-5)

    # padding=False branch ("valid" filtering, 16 -> 12, no scratch)
    yv = jax.block_until_ready(filter_low(x, padding=False))
    np.testing.assert_allclose(np.asarray(yv), _reference_numpy(xnp, w_avg, 0),
                               rtol=1e-4, atol=1e-5)

    # ---- lane-dense path (MXU horizontal taps, W_out = 128) ----------------
    xw = jax.random.normal(k1, (2, 3, 16, 128), dtype=jnp.float32)
    xwnp = np.asarray(xw)

    yw = jax.block_until_ready(filter_low(xw))
    np.testing.assert_allclose(np.asarray(yw), _reference_numpy(xwnp, w_avg, 2),
                               rtol=2e-4, atol=2e-5)

    ywg2 = jax.block_until_ready(filter_low(xw, gaussian=True, recursions=2))
    refg2 = _reference_numpy(_reference_numpy(xwnp, w_gauss, 2), w_gauss, 2)
    np.testing.assert_allclose(np.asarray(ywg2), refg2, rtol=2e-4, atol=2e-5)

    print("KERNEL_OK")
</pallas_src>

<mosaic_0001>
module attributes {stable_mosaic.version = 11 : i64} {
  func.func @kernel(%arg0: i32, %arg1: memref<2x16x16xf32, #tpu.memory_space<vmem>>, %arg2: memref<2x16x16xf32, #tpu.memory_space<vmem>>, %arg3: memref<2x26x20xf32, #tpu.memory_space<vmem>>) attributes {dimension_semantics = [#tpu.dimension_semantics<parallel>], iteration_bounds = array<i64: 4>, scalar_prefetch = 0 : i64, scratch_operands = 1 : i64, tpu.core_type = #tpu.core_type<tc>, window_params = [{transform_indices = @transform_0, window_bounds = array<i64: 2, 16, 16>}, {transform_indices = @transform_1, window_bounds = array<i64: 2, 16, 16>}]} {
    %cst = arith.constant 0.000000e+00 : f32
    %0 = vector.broadcast %cst : f32 to vector<2x2x20xf32>
    %cst_0 = arith.constant 0.000000e+00 : f32
    %1 = vector.broadcast %cst_0 : f32 to vector<2x16x2xf32>
    %c0 = arith.constant 0 : index
    %c6 = arith.constant 6 : index
    %c0_1 = arith.constant 0 : index
    %2 = vector.load %arg3[%c0, %c6, %c0_1] : memref<2x26x20xf32, #tpu.memory_space<vmem>>, vector<2x2x20xf32>
    tpu.vector_store %arg3[%c0, %c6, %c0_1], %0 {strides = array<i32>} : memref<2x26x20xf32, #tpu.memory_space<vmem>>, vector<2x2x20xf32>,
    %c0_2 = arith.constant 0 : index
    %c24 = arith.constant 24 : index
    %c0_3 = arith.constant 0 : index
    %3 = vector.load %arg3[%c0_2, %c24, %c0_3] : memref<2x26x20xf32, #tpu.memory_space<vmem>>, vector<2x2x20xf32>
    tpu.vector_store %arg3[%c0_2, %c24, %c0_3], %0 {strides = array<i32>} : memref<2x26x20xf32, #tpu.memory_space<vmem>>, vector<2x2x20xf32>,
    %c0_4 = arith.constant 0 : index
    %c8 = arith.constant 8 : index
    %c0_5 = arith.constant 0 : index
    %4 = vector.load %arg3[%c0_4, %c8, %c0_5] : memref<2x26x20xf32, #tpu.memory_space<vmem>>, vector<2x16x2xf32>
    tpu.vector_store %arg3[%c0_4, %c8, %c0_5], %1 {strides = array<i32>} : memref<2x26x20xf32, #tpu.memory_space<vmem>>, vector<2x16x2xf32>,
    %c0_6 = arith.constant 0 : index
    %c8_7 = arith.constant 8 : index
    %c18 = arith.constant 18 : index
    %5 = vector.load %arg3[%c0_6, %c8_7, %c18] : memref<2x26x20xf32, #tpu.memory_space<vmem>>, vector<2x16x2xf32>
    tpu.vector_store %arg3[%c0_6, %c8_7, %c18], %1 {strides = array<i32>} : memref<2x26x20xf32, #tpu.memory_space<vmem>>, vector<2x16x2xf32>,
    %c0_8 = arith.constant 0 : index
    %c0_9 = arith.constant 0 : index
    %c0_10 = arith.constant 0 : index
    %6 = vector.load %arg1[%c0_8, %c0_9, %c0_10] : memref<2x16x16xf32, #tpu.memory_space<vmem>>, vector<2x16x16xf32>
    %c0_11 = arith.constant 0 : index
    %c8_12 = arith.constant 8 : index
    %c2 = arith.constant 2 : index
    %7 = vector.load %arg3[%c0_11, %c8_12, %c2] : memref<2x26x20xf32, #tpu.memory_space<vmem>>, vector<2x16x16xf32>
    tpu.vector_store %arg3[%c0_11, %c8_12, %c2], %6 {strides = array<i32>} : memref<2x26x20xf32, #tpu.memory_space<vmem>>, vector<2x16x16xf32>,
    %c0_13 = arith.constant 0 : index
    %c6_14 = arith.constant 6 : index
    %c0_15 = arith.constant 0 : index
    %8 = vector.load %arg3[%c0_13, %c6_14, %c0_15] : memref<2x26x20xf32, #tpu.memory_space<vmem>>, vector<2x16x20xf32>
    %c0_16 = arith.constant 0 : index
    %c7 = arith.constant 7 : index
    %c0_17 = arith.constant 0 : index
    %9 = vector.load %arg3[%c0_16, %c7, %c0_17] : memref<2x26x20xf32, #tpu.memory_space<vmem>>, vector<2x16x20xf32>
    %10 = arith.addf %8, %9 : vector<2x16x20xf32>
    %c0_18 = arith.constant 0 : index
    %c8_19 = arith.constant 8 : index
    %c0_20 = arith.constant 0 : index
    %11 = vector.load %arg3[%c0_18, %c8_19, %c0_20] : memref<2x26x20xf32, #tpu.memory_space<vmem>>, vector<2x16x20xf32>
    %12 = arith.addf %10, %11 : vector<2x16x20xf32>
    %c0_21 = arith.constant 0 : index
    %c9 = arith.constant 9 : index
    %c0_22 = arith.constant 0 : index
    %13 = vector.load %arg3[%c0_21, %c9, %c0_22] : memref<2x26x20xf32, #tpu.memory_space<vmem>>, vector<2x16x20xf32>
    %14 = arith.addf %12, %13 : vector<2x16x20xf32>
    %c0_23 = arith.constant 0 : index
    %c10 = arith.constant 10 : index
    %c0_24 = arith.constant 0 : index
    %15 = vector.load %arg3[%c0_23, %c10, %c0_24] : memref<2x26x20xf32, #tpu.memory_space<vmem>>, vector<2x16x20xf32>
    %16 = arith.addf %14, %15 : vector<2x16x20xf32>
    %17 = vector.extract_strided_slice %16 {offsets = [0, 0, 0], sizes = [2, 16, 16], strides = [1, 1, 1]} : vector<2x16x20xf32> to vector<2x16x16xf32>
    %18 = vector.extract_strided_slice %16 {offsets = [0, 0, 1], sizes = [2, 16, 16], strides = [1, 1, 1]} : vector<2x16x20xf32> to vector<2x16x16xf32>
    %19 = arith.addf %17, %18 : vector<2x16x16xf32>
    %20 = vector.extract_strided_slice %16 {offsets = [0, 0, 2], sizes = [2, 16, 16], strides = [1, 1, 1]} : vector<2x16x20xf32> to vector<2x16x16xf32>
    %21 = arith.addf %19, %20 : vector<2x16x16xf32>
    %22 = vector.extract_strided_slice %16 {offsets = [0, 0, 3], sizes = [2, 16, 16], strides = [1, 1, 1]} : vector<2x16x20xf32> to vector<2x16x16xf32>
    %23 = arith.addf %21, %22 : vector<2x16x16xf32>
    %24 = vector.extract_strided_slice %16 {offsets = [0, 0, 4], sizes = [2, 16, 16], strides = [1, 1, 1]} : vector<2x16x20xf32> to vector<2x16x16xf32>
    %25 = arith.addf %23, %24 : vector<2x16x16xf32>
    %cst_25 = arith.constant 4.000000e-02 : f32
    %26 = vector.broadcast %cst_25 : f32 to vector<2x16x16xf32>
    %27 = arith.mulf %25, %26 : vector<2x16x16xf32>
    %c0_26 = arith.constant 0 : index
    %c0_27 = arith.constant 0 : index
    %c0_28 = arith.constant 0 : index
    %28 = vector.load %arg2[%c0_26, %c0_27, %c0_28] : memref<2x16x16xf32, #tpu.memory_space<vmem>>, vector<2x16x16xf32>
    tpu.vector_store %arg2[%c0_26, %c0_27, %c0_28], %27 {strides = array<i32>} : memref<2x16x16xf32, #tpu.memory_space<vmem>>, vector<2x16x16xf32>,
    return
  }
  func.func @transform_0(%arg0: i32) -> (i32, i32, i32) {
    %c0_i32 = arith.constant 0 : i32
    %c0_i32_0 = arith.constant 0 : i32
    %c0_i32_1 = arith.constant 0 : i32
    return %arg0, %c0_i32, %c0_i32_0 : i32, i32, i32
  }
  func.func @transform_1(%arg0: i32) -> (i32, i32, i32) {
    %c0_i32 = arith.constant 0 : i32
    %c0_i32_0 = arith.constant 0 : i32
    %c0_i32_1 = arith.constant 0 : i32
    return %arg0, %c0_i32, %c0_i32_0 : i32, i32, i32
  }
}

</mosaic_0001>

<bundles_post_ra>
// kernel: tpu_custom_call.1
= control target key start
LH: loop header
LB: loop body
LE: loop exit
PB: predicated region body
PF: predicated region fallthrough
CT: control target
= control target key end

     0   :  { %6 = vsyncpa [#allocation4], 0  ;;  %s710_s0 = inlined_call_operand.hbm [shape: f32[8,16,16], index: 0, kind: input, shape index: {}]   ;;  %s711_s1 = inlined_call_operand.hbm [shape: f32[8,16,16], index: 1, kind: output, shape index: {}]  }
   0x1   :  { %8 = vsyncpa [#allocation4 + $0x1], 0 }
   0x2   :  { %9 = vsyncpa [#allocation5], 0 }
   0x3   :  { %11 = vsyncpa [#allocation5 + $0x1], 0  ;;  %s577_s6 = smov 0   ;;  %s579_s7 = smov 0  }
   0x4   :  { %s581_s8 = smov 0   ;;  %s583_s9 = smov 0  }
   0x5 LB: > { %s598_s10 = sadd.s32 4294967295, %s555_s9   ;;  %s383_s11 = sadd.s32 4294967294, %s555_s9   ;;  %s555_s9 = sphi %s583_s9, %s720_s9   ;;  %s551_s8 = sphi %s581_s8, %s719_s8   ;;  %s547_s7 = sphi %s579_s7, %s718_s7   ;;  %s543_s6 = sphi %s577_s6, %s717_s6  }
   0x6   : > { %s602_s12 = sadd.s32 1, %s555_s9   ;;  %s24_s13 = sadd.s32 1, %s551_s8 }
   0x7   : > { %s21_s14 = ssub.s32 %s555_s9, %s602_s12  ;;  %p31_p0 = scmp.ne.s32.totalorder %s551_s8, %s547_s7 }
   0x8   : > { %p22_p1 = scmp.eq.s32.totalorder %s21_s14, 0  ;;  %p32_p2 = scmp.eq.s32.totalorder %s555_s9, 0 }
   0x9   : > { %p37_p3 = scmp.ne.s32.totalorder %s547_s7, %s543_s6  ;;  %p38_p4 = scmp.eq.s32.totalorder %s598_s10, 0 }
   0xa   : > { %s614_s15 = scalar_select %p22_p1, %s551_s8, %s24_s13  }
   0xb   : > { %p616_p5 = por %p32_p2, %p31_p0  ;;  %p620_p6 = por %p38_p4, %p37_p3 }
   0xc   : > { %p61_p7 = scmp.eq.s32.totalorder %s598_s10, 3  ;;  %p67_p8 = scmp.eq.s32.totalorder %s383_s11, 3 }
   0xd   : > { %p415_p9 = scmp.lt.s32.totalorder %s555_s9, 4  ;;  %s87_s20 = sand.u32 1, %s551_s8  }
   0xe   : > { %p626_p10 = por %p61_p7, %p31_p0  ;;  %p630_p11 = por %p67_p8, %p37_p3 }
   0xf   : > { %s400_s21 = sshll.u32 %s555_s9, 5  ;;  %s386_s22 = sshll.u32 %s87_s20, 5 }
  0x10   : > { %s97_s25 = scalar_lea.hbm %s710_s0, %s400_s21  ;;  %s91_s27 = scalar_lea.vmem [#allocation3], %s386_s22 }
  0x11   : > { %s98_s26 = sshll.u32 %s97_s25, 4  ;;  %s100_s28 = sshll.u32 %s91_s27, 4  ;;  %s99_s26 = int_to_ptr.hbm [resolvable:$true] %s98_s26  ;;  %s101_s28 = int_to_ptr.vmem [resolvable:$true] %s100_s28 }
  0x12   : > { %p641_p12 = pnand %p415_p9, %p616_p5  ;;  %p390_p13 = scmp.ge.s32.totalorder %s555_s9, 1 }
  0x13   : > { %p108_p0 = scmp.lt.s32.totalorder %s555_s9, 5  ;;  %s88_s30 = scalar_lea.sflag [#allocation4], %s87_s20 }
  0x14   : > { %s459_s2 = sshra.s32 %s99_s26, 4  ;;  %p463_p2 = pneg %p641_p12  ;;  %s460_s2 = int_to_ptr.hbm [resolvable:$true] %s459_s2 }
  0x15   : > { %s461_s3 = scalar_lea.hbm %s460_s2, 32  ;;  %s466_s11 = scalar_lea.hbm %s710_s0, 128 }
  0x16   : > { %p462_p1 = scmp.ne.s32.totalorder %s460_s2, %s461_s3  ;;  %p467_p5 = scmp.lt.s32.totalorder %s460_s2, %s710_s0 }
  0x17   : > { %p468_p7 = scmp.lt.s32.totalorder %s466_s11, %s461_s3 }
  0x18   : > { %p464_p3 = pnand %p463_p2, %p462_p1 }
  0x19   : > { %p469_p8 = por %p468_p7, %p467_p5 }
  0x1a   : > { %p465_p4 = pneg %p464_p3 }
  0x1c   : > { %p470_p9 = pnand %p469_p8, %p465_p4 }
  0x1e   : > { %473 = shalt.err (!%p470_p9)
}
  0x1f   : > { %s557_s16 = smov 128   ;;  %s558_s20 = smov 8  }
  0x20   : > { %410 = dma.hbm_to_vmem [thread:$0]  (!%p641_p12), %s99_s26, 512, %s101_s28, %s88_s30, %s557_s16, %s557_s16, %s558_s20  }
  0x21   : > { %p109_p1 = pnand %p390_p13, %p108_p0 }
  0x22   : > { %s662_s21 = sand.u32 (!%p109_p1), 1, %s547_s7  }
  0x23   : > { %112 = sbr.rel (%p109_p1) target bundleno = 341 (0x155), region = 24  ;;  %s391_s22 = sshll.u32 (!%p109_p1), %s662_s21, 5 }
  0x24   : > { %s115_s23 = scalar_lea.sflag (!%p109_p1), [#allocation4], %s662_s21  ;;  %s118_s24 = scalar_lea.vmem (!%p109_p1), [#allocation3], %s391_s22 }
  0x28   : > { %534 = dma.done.wait (%p620_p6), %s115_s23, 512  }
  0x29   : > { %536 = vsyncadd (%p620_p6), %s115_s23, 4294966784  ;;  %vm145_vm0 = vcmask 15360   ;;  %vm150_vm1 = vcmask 162960   ;;  %v559_v0 = vmov 0.0   ;;  %v157_v1 = vld [vmem:[%s118_s24 + $0x10] sm:$0xff]  ;;  %v155_v2 = vld [vmem:[%s118_s24] sm:$0xff] }
  0x2a   : > { %148 = vst.msk [vmem:[#allocation2 + $0x28] sm:$0xff] %vm145_vm0, %v559_v0  ;;  %s560_s25 = smov 2   ;;  %v158_v3 = vld [vmem:[%s118_s24 + $0x18] sm:$0xff]  ;;  %v156_v4 = vld [vmem:[%s118_s24 + $0x8] sm:$0xff]  ;;  %vm140_vm2 = vcmask 156672   ;;  %vm175_vm3 = vcmask 146448  }
  0x2b   : > { %153 = vst.msk [vmem:[#allocation2 + $0x28] sm:$0xff] %vm150_vm1, %v559_v0  ;;  %167 = vrot.lane.b32.xlu1 %v157_v1, %s560_s25  ;;  %163 = vrot.lane.b32.xlu0 %v155_v2, %s560_s25  ;;  %s561_s17 = smov 127   ;;  %s562_s26 = smov 126   ;;  %vm288_vm4 = vcmask 130048  }
  0x2c   : > { %146 = vst.msk [vmem:[#allocation2 + $0x8] sm:$0xff] %vm145_vm0, %v559_v0  ;;  %s563_s27 = smov 125   ;;  %s564_s28 = smov 124  }
  0x2d   : > { %147 = vst.msk [vmem:[#allocation2 + $0x10] sm:$0xff] %vm145_vm0, %v559_v0  ;;  %s137_s29 = scalar_lea.vmem [#allocation6], %s391_s22  ;;  %s402_s30 = sshll.u32 %s598_s10, 5 }
  0x2e   : > { %149 = vst.msk [vmem:[#allocation2 + $0x30] sm:$0xff] %vm145_vm0, %v559_v0  ;;  %s306_s4 = scalar_lea.hbm %s711_s1, %s402_s30  ;;  %s307_s5 = sshll.u32 %s137_s29, 4  ;;  %s308_s5 = int_to_ptr.vmem [resolvable:$true] %s307_s5 }
  0x2f   : > { %151 = vst.msk [vmem:[#allocation2 + $0x8] sm:$0xff] %vm150_vm1, %v559_v0  ;;  %s309_s11 = sshll.u32 %s306_s4, 4  ;;  %s294_s10 = scalar_lea.sflag [#allocation5], %s662_s21  ;;  %s310_s11 = int_to_ptr.hbm [resolvable:$true] %s309_s11 }
  0x30   : > { %152 = vst.msk [vmem:[#allocation2 + $0x10] sm:$0xff] %vm150_vm1, %v559_v0  ;;  %s503_s13 = sshra.s32 %s310_s11, 4  ;;  %s509_s22 = scalar_lea.hbm %s711_s1, 128  ;;  %s504_s13 = int_to_ptr.hbm [resolvable:$true] %s503_s13 }
  0x31   : > { %154 = vst.msk [vmem:[#allocation2 + $0x30] sm:$0xff] %vm150_vm1, %v559_v0  ;;  %s505_s14 = scalar_lea.hbm %s504_s13, 32  ;;  %p510_p0 = scmp.lt.s32.totalorder %s504_s13, %s711_s1 }
  0x32   : > { %142 = vst.msk [vmem:[#allocation2 + $0x26] sm:$0x3] %vm140_vm2, %v559_v0  ;;  %p506_p6 = scmp.ne.s32.totalorder %s504_s13, %s505_s14  ;;  %p511_p2 = scmp.lt.s32.totalorder %s509_s22, %s505_s14 }
  0x33   : > { %169 = vrot.lane.b32.xlu1 %v158_v3, %s560_s25  ;;  %165 = vrot.lane.b32.xlu0 %v156_v4, %s560_s25  ;;  %141 = vst.msk [vmem:[#allocation2 + $0x6] sm:$0x3] %vm140_vm2, %v559_v0 }
  0x34   : > { %143 = vst.msk [vmem:[#allocation2 + $0x18] sm:$0x3] %vm140_vm2, %v559_v0  ;;  %p507_p12 = pnand %p506_p6, %p626_p10  ;;  %p512_p3 = por %p511_p2, %p510_p0 }
  0x35   : > { %144 = vst.msk [vmem:[#allocation2 + $0x38] sm:$0x3] %vm140_vm2, %v559_v0 }
  0x36   : > { %p508_p13 = pneg %p507_p12 }
  0x38   : > { %p513_p4 = pnand %p512_p3, %p508_p13 }
  0x9d   : > { %v168_v5 = vpop.permute.xlu1 %167  ;;  %v164_v6 = vpop.permute.xlu0 %163 }
  0x9e   : > { %178 = vst.msk [vmem:[#allocation2 + $0x28] sm:$0xff] %vm175_vm3, %v168_v5 }
  0x9f   : > { %176 = vst.msk [vmem:[#allocation2 + $0x8] sm:$0xff] %vm175_vm3, %v164_v6 }
  0xa5   : > { %v170_v7 = vpop.permute.xlu1 %169  ;;  %v166_v8 = vpop.permute.xlu0 %165  ;;  %v182_v9 = vld [vmem:[#allocation2 + $0x26] sm:$0xff] }
  0xa6   : > { %v186_v10 = vld [vmem:[#allocation2 + $0x27] sm:$0xff]  ;;  %179 = vst.msk [vmem:[#allocation2 + $0x30] sm:$0xff] %vm175_vm3, %v170_v7 }
  0xa7   : > { %v180_v11 = vld [vmem:[#allocation2 + $0x6] sm:$0xff]  ;;  %177 = vst.msk [vmem:[#allocation2 + $0x10] sm:$0xff] %vm175_vm3, %v166_v8  ;;  %v190_v14 = vadd.f32 %v186_v10, %v182_v9 }
  0xa8   : > { %v184_v12 = vld [vmem:[#allocation2 + $0x7] sm:$0xff] }
  0xa9   : > { %v188_v13 = vadd.f32 %v184_v12, %v180_v11  ;;  %v192_v15 = vld [vmem:[#allocation2 + $0x8] sm:$0xff] }
  0xaa   : > { %v194_v16 = vld [vmem:[#allocation2 + $0x28] sm:$0xff] }
  0xab   : > { %v196_v17 = vadd.f32 %v192_v15, %v188_v13  ;;  %v198_v18 = vadd.f32 %v194_v16, %v190_v14 }
  0xad   : > { %v202_v19 = vld [vmem:[#allocation2 + $0x29] sm:$0xff]  ;;  %v203_v36 = vld [vmem:[#allocation2 + $0x31] sm:$0xff] }
  0xae   : > { %v183_v20 = vld [vmem:[#allocation2 + $0x2e] sm:$0xff]  ;;  %v206_v21 = vadd.f32 %v202_v19, %v198_v18 }
  0xaf   : > { %v200_v22 = vld [vmem:[#allocation2 + $0x9] sm:$0xff]  ;;  %v201_v37 = vld [vmem:[#allocation2 + $0x11] sm:$0xff] }
  0xb0   : > { %v187_v23 = vld [vmem:[#allocation2 + $0x2f] sm:$0xff]  ;;  %v204_v25 = vadd.f32 %v200_v22, %v196_v17 }
  0xb1   : > { %v210_v24 = vld [vmem:[#allocation2 + $0x2a] sm:$0xff]  ;;  %v191_v27 = vadd.f32 %v187_v23, %v183_v20  ;;  %v211_v40 = vld [vmem:[#allocation2 + $0x32] sm:$0xff] }
  0xb2   : > { %v208_v26 = vld [vmem:[#allocation2 + $0xa] sm:$0xff]  ;;  %v214_v29 = vadd.f32 %v210_v24, %v206_v21  ;;  %v209_v43 = vld [vmem:[#allocation2 + $0x12] sm:$0xff] }
  0xb3   : > { %v195_v28 = vld [vmem:[#allocation2 + $0x30] sm:$0xff]  ;;  %v212_v33 = vadd.f32 %v208_v26, %v204_v25 }
  0xb4   : > { %v181_v30 = vld [vmem:[#allocation2 + $0xe] sm:$0xff]  ;;  %v199_v34 = vadd.f32 %v195_v28, %v191_v27  ;;  %224 = vrot.lane.b32.xlu0 %v214_v29, %s561_s17 }
  0xb5   : > { %v185_v31 = vld [vmem:[#allocation2 + $0xf] sm:$0xff]  ;;  %220 = vrot.lane.b32.xlu2 %v212_v33, %s561_s17 }
  0xb6   : > { %v193_v32 = vld [vmem:[#allocation2 + $0x10] sm:$0xff]  ;;  %v189_v35 = vadd.f32 %v185_v31, %v181_v30  ;;  %v207_v38 = vadd.f32 %v203_v36, %v199_v34 }
  0xb8   : > { %v197_v39 = vadd.f32 %v193_v32, %v189_v35  ;;  %v215_v41 = vadd.f32 %v211_v40, %v207_v38 }
  0xba   : > { %v205_v42 = vadd.f32 %v201_v37, %v197_v39  ;;  %226 = vrot.lane.b32.xlu1 %v215_v41, %s561_s17 }
  0xbc   : > { %v213_v44 = vadd.f32 %v209_v43, %v205_v42 }
  0xbe   : > { %238 = vrot.lane.b32.xlu0 %v213_v44, %s562_s26  ;;  %222 = vrot.lane.b32.xlu2 %v213_v44, %s561_s17 }
  0xc2   : > { %240 = vrot.lane.b32.xlu1 %v214_v29, %s562_s26 }
  0xc6   : > { %252 = vrot.lane.b32.xlu0 %v212_v33, %s563_s27  ;;  %236 = vrot.lane.b32.xlu2 %v212_v33, %s562_s26 }
  0xca   : > { %254 = vrot.lane.b32.xlu1 %v213_v44, %s563_s27 }
  0xce   : > { %258 = vrot.lane.b32.xlu0 %v215_v41, %s563_s27  ;;  %242 = vrot.lane.b32.xlu2 %v215_v41, %s562_s26 }
  0xd2   : > { %268 = vrot.lane.b32.xlu1 %v212_v33, %s564_s28 }
  0xd6   : > { %272 = vrot.lane.b32.xlu0 %v214_v29, %s564_s28  ;;  %256 = vrot.lane.b32.xlu2 %v214_v29, %s563_s27 }
  0xda   : > { %274 = vrot.lane.b32.xlu1 %v215_v41, %s564_s28 }
  0xde   : > { %270 = vrot.lane.b32.xlu2 %v213_v44, %s564_s28 }
 0x10f   : > { %v221_v45 = vpop.permute.xlu2 %220 }
 0x110   : > { %v232_v60 = vadd.f32 %v221_v45, %v212_v33 }
 0x118   : > { %v223_v46 = vpop.permute.xlu2 %222 }
 0x119   : > { %v233_v55 = vadd.f32 %v223_v46, %v213_v44 }
 0x120   : > { %v237_v47 = vpop.permute.xlu2 %236 }
 0x121   : > { %v248_v0 = vadd.f32 %v237_v47, %v232_v60 }
 0x126   : > { %v225_v48 = vpop.permute.xlu0 %224 }
 0x127   : > { %v234_v63 = vadd.f32 %v225_v48, %v214_v29 }
 0x128   : > { %v243_v49 = vpop.permute.xlu2 %242 }
 0x12c   : > { %v227_v50 = vpop.permute.xlu1 %226 }
 0x12d   : > { %v235_v5 = vadd.f32 %v227_v50, %v215_v41 }
 0x12f   : > { %v251_v11 = vadd.f32 %v243_v49, %v235_v5 }
 0x130   : > { %v239_v51 = vpop.permute.xlu0 %238  ;;  %v257_v52 = vpop.permute.xlu2 %256 }
 0x131   : > { %v249_v56 = vadd.f32 %v239_v51, %v233_v55 }
 0x134   : > { %v241_v53 = vpop.permute.xlu1 %240 }
 0x135   : > { %v250_v2 = vadd.f32 %v241_v53, %v234_v63 }
 0x137   : > { %v266_v7 = vadd.f32 %v257_v52, %v250_v2 }
 0x138   : > { %v253_v54 = vpop.permute.xlu0 %252  ;;  %v271_v59 = vpop.permute.xlu2 %270 }
 0x139   : > { %v264_v3 = vadd.f32 %v253_v54, %v248_v0 }
 0x13c   : > { %v255_v57 = vpop.permute.xlu1 %254 }
 0x13d   : > { %v265_v58 = vadd.f32 %v255_v57, %v249_v56 }
 0x13f   : > { %v281_v61 = vadd.f32 %v271_v59, %v265_v58 }
 0x140   : > { %v259_v62 = vpop.permute.xlu0 %258 }
 0x141   : > { %v285_v1 = vmul.f32 0.04, %v281_v61  ;;  %v267_v13 = vadd.f32 %v259_v62, %v251_v11 }
 0x143   : > { %290 = vst.msk [vmem:[%s137_s29 + $0x8] sm:$0xff] %vm288_vm4, %v285_v1 }
 0x144   : > { %v269_v4 = vpop.permute.xlu1 %268 }
 0x145   : > { %v280_v6 = vadd.f32 %v269_v4, %v264_v3 }
 0x147   : > { %v284_v8 = vmul.f32 0.04, %v280_v6 }
 0x148   : > { %v273_v9 = vpop.permute.xlu0 %272 }
 0x149   : > { %v282_v10 = vadd.f32 %v273_v9, %v266_v7  ;;  %289 = vst.msk [vmem:[%s137_s29] sm:$0xff] %vm288_vm4, %v284_v8 }
 0x14b   : > { %v286_v12 = vmul.f32 0.04, %v282_v10 }
 0x14c   : > { %v275_v14 = vpop.permute.xlu1 %274 }
 0x14d   : > { %291 = vst.msk [vmem:[%s137_s29 + $0x10] sm:$0xff] %vm288_vm4, %v286_v12  ;;  %v283_v15 = vadd.f32 %v275_v14, %v267_v13 }
 0x14f   : > { %v287_v16 = vmul.f32 0.04, %v283_v15 }
 0x151   : > { %292 = vst.msk [vmem:[%s137_s29 + $0x18] sm:$0xff] %vm288_vm4, %v287_v16 }
 0x152   : > { %516 = shalt.err (!%p513_p4)
}
 0x153   : > { %s565_s21 = smov 128   ;;  %s566_s25 = smov 8  }
 0x154   : > { %405 = dma.vmem_to_hbm [thread:$0]  (%p626_p10), %s308_s5, 512, %s310_s11, %s294_s10, %s565_s21, %s565_s21, %s566_s25  }
 0x155 PF: > { %p416_p5 = scmp.ge.s32.totalorder %s555_s9, 2  ;;  %s324_s17 = sand.u32 1, %s543_s6  }
 0x156   : > { %s325_s26 = scalar_lea.sflag [#allocation5], %s324_s17 }
 0x157   : > { %p412_p7 = pnand %p416_p5, %p630_p11 }
 0x159   : > { %p413_p8 = pneg %p412_p7 }
 0x15b   : > { %538 = dma.done.wait (%p413_p8), %s325_s26, 512  }
 0x15c   : > { %540 = vsyncadd (%p413_p8), %s325_s26, 4294966784  ;;  %p14_p9 = scmp.ge.s32.totalorder %s602_s12, 6   ;;  %s717_s6 = smov %s547_s7 }
 0x15d   : > { %s718_s7 = smov %s551_s8  ;;  %s719_s8 = smov %s614_s15 }
 0x15e   : > { %s720_s9 = smov %s602_s12  ;;  %16 = sbr.rel (!%p14_p9) target bundleno = 5 (0x5), region = 69 }
 0x163   :  { %331 = vsyncpa [#allocation4], 1 }
 0x164   :  { %333 = vsyncpa [#allocation4 + $0x1], 1 }
 0x165   :  { %334 = vsyncpa [#allocation5], 1 }
 0x166   :  { %336 = vsyncpa [#allocation5 + $0x1], 1 }

</bundles_post_ra>
